<compile_context>
chip_gen: v5e
topology: v5e:2x2
jax: 0.10.0
libtpu: 0.0.40
codegen_flags: <defaults>
</compile_context>

<pallas_src>
import functools

import jax
import jax.numpy as jnp
from jax.experimental import pallas as pl
from jax.experimental.pallas import tpu as pltpu

# DWTForward is cast to fp16 in the PyTorch module, so the haar filter taps are
# the fp16 rounding of 1/sqrt(2).  One level of 2-D DWT applies the tap twice.
SQRT_HALF_F16 = float(jnp.float16(2.0 ** -0.5))
DWT_SCALE = SQRT_HALF_F16 * SQRT_HALF_F16
# TODO(synk): intermediate fp16 rounding of the separable filtering itself is
# not reproduced bit-exactly; compute is done in f32 (within f32 tolerance).

# Haar sign matrix: rows = bands [LL, HL, LH, HH], cols = polyphase samples
# [a=x(2i,2j), b=x(2i,2j+1), c=x(2i+1,2j), d=x(2i+1,2j+1)].
HAAR4 = jnp.array(
    [[1.0, 1.0, 1.0, 1.0],
     [1.0, 1.0, -1.0, -1.0],
     [1.0, -1.0, 1.0, -1.0],
     [1.0, -1.0, -1.0, 1.0]], dtype=jnp.float32)


def hwd_kernel(x_ref, w_ref, bias_ref, o_ref):
    # x_ref: (4*Cin, TM) lane-dense polyphase tokens
    # w_ref: (Cout, 4*Cin) Haar + conv + BN-scale folded weight
    # bias_ref: (Cout, 1) folded bias
    y = jnp.dot(w_ref[...], x_ref[...], preferred_element_type=jnp.float32)
    y = y + bias_ref[...]                      # broadcast over lanes
    o_ref[...] = jnp.maximum(y, 0.0).astype(o_ref.dtype)


@functools.partial(jax.jit, static_argnames=("eps",))
def hw_downsampling(x, conv_w, conv_b, bn_gamma, bn_beta, bn_mean, bn_var, eps=1e-5):
    """x: (N, Cin, H, W) float32;  conv_w: (Cout, 4*Cin);  returns (N, Cout, H//2, W//2)."""
    N, Cin, H, W = x.shape
    assert H % 2 == 0 and W % 2 == 0, "Haar DWT with mode='zero' here assumes even H, W"
    Cout = conv_w.shape[0]
    Ho, Wo = H // 2, W // 2
    M = N * Ho * Wo

    # --- glue: one fused polyphase split -> (4*Cin, M), tokens on lanes -------
    # row index = ((row_parity*2 + col_parity) * Cin + c), i.e. [a|b|c|d] blocks
    xr = x.reshape(N, Cin, Ho, 2, Wo, 2)
    X = xr.transpose(3, 5, 1, 0, 2, 4).reshape(4 * Cin, M)

    # --- glue: fold Haar combination + BN scale into the conv weight ----------
    # conv_w input channel order is [LL_0..LL_{C-1}, HL_.., LH_.., HH_..]
    W4 = conv_w.reshape(Cout, 4, Cin).astype(jnp.float32)             # (o, band, c)
    W_eff = jnp.einsum('obc,bp->opc', W4, HAAR4) * DWT_SCALE          # (o, poly, c)
    W_eff = W_eff.reshape(Cout, 4 * Cin)
    scale = (bn_gamma / jnp.sqrt(bn_var + eps)).astype(jnp.float32)   # (Cout,)
    W_eff = W_eff * scale[:, None]
    bias_eff = (scale * (conv_b - bn_mean) + bn_beta).astype(jnp.float32).reshape(Cout, 1)

    # --- tile the token (lane) axis --------------------------------------------
    # Big token tiles amortize per-step overhead; keep a multi-step grid when M
    # is large so v7x's 2 TensorCores both get work ("parallel" axis).
    TM_TARGET = 2048
    if M <= TM_TARGET:
        TM = M                      # full-dim block (allowed even if not %128)
        M_pad = M
    else:
        TM = TM_TARGET
        M_pad = -(-M // TM) * TM
    if M_pad != M:
        X = jnp.pad(X, ((0, 0), (0, M_pad - M)))

    grid = (M_pad // TM,)

    out = pl.pallas_call(
        hwd_kernel,
        out_shape=jax.ShapeDtypeStruct((Cout, M_pad), x.dtype),
        grid_spec=pltpu.PrefetchScalarGridSpec(
            num_scalar_prefetch=0,
            grid=grid,
            in_specs=[
                pl.BlockSpec((4 * Cin, TM), lambda i: (0, i)),   # lane-dense tokens
                pl.BlockSpec((Cout, 4 * Cin), lambda i: (0, 0)), # resident weight
                pl.BlockSpec((Cout, 1), lambda i: (0, 0)),       # resident bias
            ],
            out_specs=pl.BlockSpec((Cout, TM), lambda i: (0, i)),
        ),
        compiler_params=pltpu.CompilerParams(
            dimension_semantics=("parallel",),
            vmem_limit_bytes=32 * 1024 * 1024,
        ),
    )(X, W_eff, bias_eff)

    # --- glue: back to NCHW (cheap N <-> Cout swap, no NHWC transpose) ---------
    out = out[:, :M].reshape(Cout, N, Ho, Wo).transpose(1, 0, 2, 3)
    return out


def reference(x, conv_w, conv_b, bn_gamma, bn_beta, bn_mean, bn_var, eps=1e-5):
    """Pure-JAX reference of the PyTorch forward (BatchNorm in eval mode)."""
    a = x[:, :, 0::2, 0::2]
    b = x[:, :, 0::2, 1::2]
    c = x[:, :, 1::2, 0::2]
    d = x[:, :, 1::2, 1::2]
    ll = (a + b + c + d) * DWT_SCALE
    hl = (a + b - c - d) * DWT_SCALE
    lh = (a - b + c - d) * DWT_SCALE
    hh = (a - b - c + d) * DWT_SCALE
    feat = jnp.concatenate([ll, hl, lh, hh], axis=1)                 # (N, 4C, Ho, Wo)
    y = jnp.einsum('ok,nkhw->nohw', conv_w, feat) + conv_b[None, :, None, None]
    y = bn_gamma[None, :, None, None] * (y - bn_mean[None, :, None, None]) \
        / jnp.sqrt(bn_var[None, :, None, None] + eps) + bn_beta[None, :, None, None]
    return jnp.maximum(y, 0.0)


if __name__ == "__main__":
    key = jax.random.PRNGKey(0)
    k_x, k_w, k_b, k_g, k_be, k_m, k_v = jax.random.split(key, 7)

    N, Cin, H, W = 2, 4, 16, 16
    Cout = 8

    x = jax.random.normal(k_x, (N, Cin, H, W), dtype=jnp.float32)

    # Deterministic synthetic parameters (shapes match nn.Conv2d(4*Cin, Cout, 1) + BatchNorm2d(Cout)).
    conv_w = 0.1 * jax.random.normal(k_w, (Cout, 4 * Cin), dtype=jnp.float32)
    conv_b = 0.05 * jax.random.normal(k_b, (Cout,), dtype=jnp.float32)
    bn_gamma = 0.5 + jax.random.uniform(k_g, (Cout,), dtype=jnp.float32)
    bn_beta = 0.05 * jax.random.normal(k_be, (Cout,), dtype=jnp.float32)
    bn_mean = 0.05 * jax.random.normal(k_m, (Cout,), dtype=jnp.float32)
    bn_var = 0.5 + jax.random.uniform(k_v, (Cout,), dtype=jnp.float32)

    out = hw_downsampling(x, conv_w, conv_b, bn_gamma, bn_beta, bn_mean, bn_var)
    out = jax.block_until_ready(out)

    ref = reference(x, conv_w, conv_b, bn_gamma, bn_beta, bn_mean, bn_var)
    assert out.shape == (N, Cout, H // 2, W // 2), out.shape
    assert jnp.allclose(out, ref, atol=1e-4, rtol=1e-4), float(jnp.max(jnp.abs(out - ref)))

    print("KERNEL_OK")
</pallas_src>

<mosaic_0001>
module attributes {stable_mosaic.version = 11 : i64} {
  func.func @hwd_kernel(%arg0: i32, %arg1: memref<16x128xf32, #tpu.memory_space<vmem>>, %arg2: memref<8x16xf32, #tpu.memory_space<vmem>>, %arg3: memref<8x1xf32, #tpu.memory_space<vmem>>, %arg4: memref<8x128xf32, #tpu.memory_space<vmem>>) attributes {dimension_semantics = [#tpu.dimension_semantics<parallel>], iteration_bounds = array<i64: 1>, scalar_prefetch = 0 : i64, scratch_operands = 0 : i64, tpu.core_type = #tpu.core_type<tc>, window_params = [{transform_indices = @transform_0, window_bounds = array<i64: 16, 128>}, {pipeline_mode = #tpu.pipeline_mode<synchronous>, transform_indices = @transform_1, window_bounds = array<i64: 8, 16>}, {pipeline_mode = #tpu.pipeline_mode<synchronous>, transform_indices = @transform_2, window_bounds = array<i64: 8, 1>}, {transform_indices = @transform_3, window_bounds = array<i64: 8, 128>}]} {
    %c0 = arith.constant 0 : index
    %c0_0 = arith.constant 0 : index
    %0 = vector.load %arg2[%c0, %c0_0] : memref<8x16xf32, #tpu.memory_space<vmem>>, vector<8x16xf32>
    %c0_1 = arith.constant 0 : index
    %c0_2 = arith.constant 0 : index
    %1 = vector.load %arg1[%c0_1, %c0_2] : memref<16x128xf32, #tpu.memory_space<vmem>>, vector<16x128xf32>
    %cst = arith.constant dense<0.000000e+00> : vector<8x128xf32>
    %2 = tpu.matmul %0, %1, %cst {dimension_numbers = #tpu.dot_dimension_numbers<[1], [0], [0], [1], [0, 0, 1, 1], [], []>} : vector<8x16xf32>, vector<16x128xf32>, vector<8x128xf32> -> vector<8x128xf32>
    %c0_3 = arith.constant 0 : index
    %c0_4 = arith.constant 0 : index
    %3 = vector.load %arg3[%c0_3, %c0_4] : memref<8x1xf32, #tpu.memory_space<vmem>>, vector<8x1xf32>
    %4 = vector.broadcast %3 : vector<8x1xf32> to vector<8x128xf32>
    %5 = arith.addf %2, %4 : vector<8x128xf32>
    %cst_5 = arith.constant 0.000000e+00 : f32
    %6 = vector.broadcast %cst_5 : f32 to vector<8x128xf32>
    %7 = arith.maximumf %5, %6 : vector<8x128xf32>
    %c0_6 = arith.constant 0 : index
    %c0_7 = arith.constant 0 : index
    %8 = vector.load %arg4[%c0_6, %c0_7] : memref<8x128xf32, #tpu.memory_space<vmem>>, vector<8x128xf32>
    tpu.vector_store %arg4[%c0_6, %c0_7], %7 {strides = array<i32>} : memref<8x128xf32, #tpu.memory_space<vmem>>, vector<8x128xf32>,
    return
  }
  func.func @transform_0(%arg0: i32) -> (i32, i32) {
    %c0_i32 = arith.constant 0 : i32
    %c0_i32_0 = arith.constant 0 : i32
    return %c0_i32, %arg0 : i32, i32
  }
  func.func @transform_1(%arg0: i32) -> (i32, i32) {
    %c0_i32 = arith.constant 0 : i32
    %c0_i32_0 = arith.constant 0 : i32
    %c0_i32_1 = arith.constant 0 : i32
    return %c0_i32, %c0_i32_0 : i32, i32
  }
  func.func @transform_2(%arg0: i32) -> (i32, i32) {
    %c0_i32 = arith.constant 0 : i32
    %c0_i32_0 = arith.constant 0 : i32
    %c0_i32_1 = arith.constant 0 : i32
    return %c0_i32, %c0_i32_0 : i32, i32
  }
  func.func @transform_3(%arg0: i32) -> (i32, i32) {
    %c0_i32 = arith.constant 0 : i32
    %c0_i32_0 = arith.constant 0 : i32
    return %c0_i32, %arg0 : i32, i32
  }
}

</mosaic_0001>

<bundles_post_ra>
// kernel: hw_downsampling.1
= control target key start
LH: loop header
LB: loop body
LE: loop exit
PB: predicated region body
PF: predicated region fallthrough
CT: control target
= control target key end

     0   :  { %v56_v2 = vmov 0   ;;  %vm23_vm0 = vcmask 130048   ;;  %s92_s0 = inlined_call_operand.vmem [shape: f32[16,128], index: 0, kind: input, shape index: {}]   ;;  %s93_s1 = inlined_call_operand.vmem [shape: f32[8,16], index: 1, kind: input, shape index: {}]   ;;  %s94_s2 = inlined_call_operand.vmem [shape: f32[8,1], index: 2, kind: input, shape index: {}]   ;;  %s95_s3 = inlined_call_operand.vmem [shape: f32[8,128], index: 3, kind: output, shape index: {}]  }
   0x1   :  { %v16_v0 = vld [vmem:[%s92_s0 + $0x8] sm:$0xff]  ;;  %v15_v1 = vld [vmem:[%s92_s0] sm:$0xff]  ;;  %55 = vset.pattern.permute.xlu0 %v56_v2 }
   0x2   :  { %41 = vmatpush.msra.mxu0 %v16_v0  ;;  %v14_v3 = vld [vmem:[%s93_s1] sm:$0xff] }
   0x3   :  { %v17_v4 = vld [vmem:[%s94_s2] sm:$0xff] }
   0x4   :  { %20 = vperm.xlu0 %55, %v17_v4   ;;  %42 = vmatpush.msra.mxu0 %v15_v1 }
   0x5   :  { %53 = vmatmul.msk.f32.vlgmr.msra.gmra.mxu0 %vm23_vm0, %v14_v3 }
  0x76   :  { %v21_v5 = vpop.permute.xlu0 %20 }
  0x82   :  { %v44_v6 = vpop.f32.mrf.mxu0 }
  0x83   :  { %v45_v7 = vadd.f32 %v44_v6, %v21_v5 }
  0x85   :  { %v47_v8 = vmax.f32 %v45_v7, 0.0 }
  0x87   :  { %48 = vst [vmem:[%s95_s3] sm:$0xff] %v47_v8 }

</bundles_post_ra>
